<compile_context>
chip_gen: v5e
topology: v5e:2x2
jax: 0.10.0
libtpu: 0.0.40
codegen_flags: <defaults>
</compile_context>

<pallas_src>
from functools import partial

import jax
import jax.numpy as jnp
from jax.experimental import pallas as pl
from jax.experimental.pallas import tpu as pltpu


def _round_up(n, m):
    return ((n + m - 1) // m) * m


def _pad2(a, rows, cols, dtype):
    r, c = a.shape
    return jnp.pad(a, ((0, rows - r), (0, cols - c))).astype(dtype)


def _physical_vmem_bytes():
    """Per-core physical VMEM capacity (conservative fallback = v7x 64 MiB)."""
    try:
        info = pltpu.get_tpu_info()
        for name in ("vmem_capacity_bytes", "vmem_size_bytes", "vmem_bytes"):
            v = getattr(info, name, None)
            if v:
                return int(v)
    except Exception:
        pass
    return 64 << 20


def vae_kernel(x_ref, eps_ref,
               w1_ref, b1_ref, w2_ref, b2_ref,
               w3_ref, b3_ref, w4_ref, b4_ref,
               recon_ref, lat_ref, *, lp):
    """One (TB, Dp) batch tile: encoder -> reparametrize -> decoder -> sigmoid."""
    x = x_ref[...].astype(jnp.bfloat16)                    # f32 HBM tile -> bf16 (VPU)

    # ---- encoder ----
    h = jnp.dot(x, w1_ref[...], preferred_element_type=jnp.float32) + b1_ref[...]
    h = jnp.maximum(h, 0.0).astype(jnp.bfloat16)           # ReLU -> bf16
    # single fused head matmul, N = 2*Lp (fills the 256-wide MXU); 128-aligned slices
    st = jnp.dot(h, w2_ref[...], preferred_element_type=jnp.float32) + b2_ref[...]
    mu = st[:, 0:lp]
    logvar = st[:, lp:2 * lp]

    # ---- reparametrize (f32): z = eps * exp(0.5 * logvar) + mu ----
    z = eps_ref[...] * jnp.exp(0.5 * logvar) + mu

    # lane-dense bf16 latent slab: [ mu | logvar | z ], each piece 128-aligned
    lat_ref[:, 0:lp] = mu.astype(jnp.bfloat16)
    lat_ref[:, lp:2 * lp] = logvar.astype(jnp.bfloat16)
    lat_ref[:, 2 * lp:3 * lp] = z.astype(jnp.bfloat16)

    # ---- decoder + sigmoid (loss_activation == activation == Sigmoid) ----
    d = jnp.dot(z.astype(jnp.bfloat16), w3_ref[...],
                preferred_element_type=jnp.float32) + b3_ref[...]
    d = jnp.maximum(d, 0.0).astype(jnp.bfloat16)
    out = jnp.dot(d, w4_ref[...], preferred_element_type=jnp.float32) + b4_ref[...]
    # sigmoid(x) = 1 / (1 + exp(-x)): exp + approx reciprocal both stay on the EUP
    recon_ref[...] = pl.reciprocal(1.0 + jnp.exp(-out), approx=True).astype(jnp.bfloat16)


@jax.jit
def vae_forward(x, eps, params):
    """VAEModule.forward: returns (recon, (mu, logvar), z)."""
    B, C, H, W = x.shape
    D = C * H * W
    HID = params["w1"].shape[1]
    L = params["w3"].shape[0]

    # Padded lane/sublane-friendly dimensions.
    Dp = _round_up(D, 128)
    HIDp = _round_up(HID, 128)
    Lp = _round_up(L, 128)

    # Batch tile: sublane multiple of 8; split into >=2 grid steps when B is large
    # enough so the "parallel" axis can shard across v7x's two TensorCores.
    TB = min(256, _round_up(B, 8))
    if B >= 16:
        TB = min(TB, _round_up(pl.cdiv(B, 2), 8))
    Bp = _round_up(B, TB)
    grid = (Bp // TB,)

    # --- pad inputs / weights; matmul operands bf16, biases/eps f32, x stays f32 ---
    x_p = _pad2(x.reshape(B, D), Bp, Dp, jnp.float32)      # no wrapper-side cast pass
    eps_p = _pad2(eps, Bp, Lp, jnp.float32)

    w1_p = _pad2(params["w1"], Dp, HIDp, jnp.bfloat16)
    b1_p = _pad2(params["b1"], 1, HIDp, jnp.float32)
    w2, b2 = params["w2"], params["b2"]                    # (HID, 2L): pad halves, refuse
    w2_p = jnp.concatenate([_pad2(w2[:, :L], HIDp, Lp, jnp.bfloat16),
                            _pad2(w2[:, L:], HIDp, Lp, jnp.bfloat16)], axis=1)
    b2_p = jnp.concatenate([_pad2(b2[:, :L], 1, Lp, jnp.float32),
                            _pad2(b2[:, L:], 1, Lp, jnp.float32)], axis=1)
    w3_p = _pad2(params["w3"], Lp, HIDp, jnp.bfloat16)
    b3_p = _pad2(params["b3"], 1, HIDp, jnp.float32)
    w4_p = _pad2(params["w4"], HIDp, Dp, jnp.bfloat16)
    b4_p = _pad2(params["b4"], 1, Dp, jnp.float32)

    # --- BlockSpecs: x/eps/outputs tiled over batch, weights resident (single-buffered) ---
    def batch_spec(cols):
        return pl.BlockSpec((TB, cols), lambda i: (i, 0))

    def resident(arr):
        # Constant index_map -> no need for double buffering; halve weight VMEM.
        return pl.BlockSpec(arr.shape, lambda i: (0, 0),
                            pipeline_mode=pl.Buffered(1))

    in_specs = [
        batch_spec(Dp),               # x tile (f32)
        batch_spec(Lp),               # eps tile (f32)
        resident(w1_p), resident(b1_p),
        resident(w2_p), resident(b2_p),
        resident(w3_p), resident(b3_p),
        resident(w4_p), resident(b4_p),
    ]
    out_specs = (batch_spec(Dp), batch_spec(3 * Lp))
    out_shape = (
        jax.ShapeDtypeStruct((Bp, Dp), jnp.bfloat16),        # recon (flat, padded)
        jax.ShapeDtypeStruct((Bp, 3 * Lp), jnp.bfloat16),    # [mu | logvar | z]
    )

    # --- VMEM budget: batch tiles double-buffered, weights single-buffered ---
    weight_bytes = 2 * (Dp * HIDp + HIDp * 2 * Lp + Lp * HIDp + HIDp * Dp)   # bf16
    bias_bytes = 4 * (2 * HIDp + 2 * Lp + Dp)                                # f32
    tile_bytes = (TB * Dp * 4 + TB * Lp * 4          # x, eps tiles (f32)
                  + TB * Dp * 2 + TB * 3 * Lp * 2)   # recon + latent tiles (bf16)
    needed = 2 * tile_bytes + weight_bytes + bias_bytes
    vmem_cap = int(0.8 * _physical_vmem_bytes())     # ~100 MiB on v5e/v6e, ~51 MiB on v7x
    vmem_limit = int(max(min(needed + (4 << 20), vmem_cap), 16 << 20))

    cost = pl.CostEstimate(
        flops=2 * Bp * (Dp * HIDp + HIDp * 2 * Lp + Lp * HIDp + HIDp * Dp),
        transcendentals=Bp * (Dp + Lp),
        bytes_accessed=(Bp * Dp * 4 + Bp * Lp * 4 + weight_bytes + bias_bytes
                        + Bp * Dp * 2 + Bp * 3 * Lp * 2),
    )

    recon_p, lat = pl.pallas_call(
        partial(vae_kernel, lp=Lp),
        grid=grid,
        in_specs=in_specs,
        out_specs=out_specs,
        out_shape=out_shape,
        compiler_params=pltpu.CompilerParams(
            dimension_semantics=("parallel",),
            vmem_limit_bytes=vmem_limit),
        cost_estimate=cost,
    )(x_p, eps_p, w1_p, b1_p, w2_p, b2_p, w3_p, b3_p, w4_p, b4_p)

    # Wrapper-side upcast (callers expect f32, kernel writes bf16 to halve HBM writes).
    recon = recon_p[:B, :D].astype(jnp.float32).reshape(B, C, H, W)
    mu = lat[:B, 0:L].astype(jnp.float32)
    logvar = lat[:B, Lp:Lp + L].astype(jnp.float32)
    z = lat[:B, 2 * Lp:2 * Lp + L].astype(jnp.float32)
    return recon, (mu, logvar), z


def init_params(key, in_dim, hidden, latent):
    """Deterministic synthetic parameters (shapes implied by the MLP enc/dec)."""
    k = jax.random.split(key, 4)
    s1, s2, s3 = 1.0 / jnp.sqrt(in_dim), 1.0 / jnp.sqrt(hidden), 1.0 / jnp.sqrt(latent)
    return {
        # encoder
        "w1": jax.random.normal(k[0], (in_dim, hidden), jnp.float32) * s1,
        "b1": jnp.zeros((1, hidden), jnp.float32),
        "w2": jax.random.normal(k[1], (hidden, 2 * latent), jnp.float32) * s2,
        "b2": jnp.zeros((1, 2 * latent), jnp.float32),
        # decoder
        "w3": jax.random.normal(k[2], (latent, hidden), jnp.float32) * s3,
        "b3": jnp.zeros((1, hidden), jnp.float32),
        "w4": jax.random.normal(k[3], (hidden, in_dim), jnp.float32) * s2,
        "b4": jnp.zeros((1, in_dim), jnp.float32),
    }


if __name__ == "__main__":
    B, C, H, W = 2, 4, 16, 16
    HID, LAT = 32, 8
    D = C * H * W

    root = jax.random.PRNGKey(0)
    k_x, k_eps, k_p = jax.random.split(root, 3)

    x = jax.random.uniform(k_x, (B, C, H, W), jnp.float32)       # image-like input
    eps = jax.random.normal(k_eps, (B, LAT), jnp.float32)        # reparam noise
    params = init_params(k_p, D, HID, LAT)

    recon, (mu, logvar), z = vae_forward(x, eps, params)
    jax.block_until_ready((recon, mu, logvar, z))

    # pure-JAX reference with the same bf16-input / f32-accumulate math
    def f32dot(a, b):
        return jnp.dot(a.astype(jnp.bfloat16), b.astype(jnp.bfloat16),
                       preferred_element_type=jnp.float32)

    xf = x.reshape(B, D)
    h_r = jnp.maximum(f32dot(xf, params["w1"]) + params["b1"], 0.0)
    st_r = f32dot(h_r, params["w2"]) + params["b2"]
    mu_r, lv_r = st_r[:, :LAT], st_r[:, LAT:]
    z_r = eps * jnp.exp(0.5 * lv_r) + mu_r
    d_r = jnp.maximum(f32dot(z_r, params["w3"]) + params["b3"], 0.0)
    rec_r = jax.nn.sigmoid(f32dot(d_r, params["w4"]) + params["b4"]).reshape(B, C, H, W)

    assert jnp.allclose(recon, rec_r, atol=1e-2), float(jnp.max(jnp.abs(recon - rec_r)))
    assert jnp.allclose(mu, mu_r, atol=1e-2), float(jnp.max(jnp.abs(mu - mu_r)))
    assert jnp.allclose(logvar, lv_r, atol=1e-2), float(jnp.max(jnp.abs(logvar - lv_r)))
    assert jnp.allclose(z, z_r, atol=1e-2), float(jnp.max(jnp.abs(z - z_r)))

    print("KERNEL_OK")
</pallas_src>

<mosaic_0001>
module attributes {stable_mosaic.version = 11 : i64} {
  func.func @vae_kernel(%arg0: i32, %arg1: memref<8x1024xf32, #tpu.memory_space<vmem>>, %arg2: memref<8x128xf32, #tpu.memory_space<vmem>>, %arg3: memref<1024x128xbf16, #tpu.memory_space<vmem>>, %arg4: memref<1x128xf32, #tpu.memory_space<vmem>>, %arg5: memref<128x256xbf16, #tpu.memory_space<vmem>>, %arg6: memref<1x256xf32, #tpu.memory_space<vmem>>, %arg7: memref<128x128xbf16, #tpu.memory_space<vmem>>, %arg8: memref<1x128xf32, #tpu.memory_space<vmem>>, %arg9: memref<128x1024xbf16, #tpu.memory_space<vmem>>, %arg10: memref<1x1024xf32, #tpu.memory_space<vmem>>, %arg11: memref<8x1024xbf16, #tpu.memory_space<vmem>>, %arg12: memref<8x384xbf16, #tpu.memory_space<vmem>>) attributes {dimension_semantics = [#tpu.dimension_semantics<parallel>], iteration_bounds = array<i64: 1>, scalar_prefetch = 0 : i64, scratch_operands = 0 : i64, tpu.core_type = #tpu.core_type<tc>, window_params = [{transform_indices = @transform_0, window_bounds = array<i64: 8, 1024>}, {transform_indices = @transform_1, window_bounds = array<i64: 8, 128>}, {pipeline_mode = #tpu.pipeline_mode<synchronous>, transform_indices = @transform_2, window_bounds = array<i64: 1024, 128>}, {pipeline_mode = #tpu.pipeline_mode<synchronous>, transform_indices = @transform_3, window_bounds = array<i64: 1, 128>}, {pipeline_mode = #tpu.pipeline_mode<synchronous>, transform_indices = @transform_4, window_bounds = array<i64: 128, 256>}, {pipeline_mode = #tpu.pipeline_mode<synchronous>, transform_indices = @transform_5, window_bounds = array<i64: 1, 256>}, {pipeline_mode = #tpu.pipeline_mode<synchronous>, transform_indices = @transform_6, window_bounds = array<i64: 128, 128>}, {pipeline_mode = #tpu.pipeline_mode<synchronous>, transform_indices = @transform_7, window_bounds = array<i64: 1, 128>}, {pipeline_mode = #tpu.pipeline_mode<synchronous>, transform_indices = @transform_8, window_bounds = array<i64: 128, 1024>}, {pipeline_mode = #tpu.pipeline_mode<synchronous>, transform_indices = @transform_9, window_bounds = array<i64: 1, 1024>}, {transform_indices = @transform_10, window_bounds = array<i64: 8, 1024>}, {transform_indices = @transform_11, window_bounds = array<i64: 8, 384>}]} {
    %c0 = arith.constant 0 : index
    %c0_0 = arith.constant 0 : index
    %0 = vector.load %arg1[%c0, %c0_0] : memref<8x1024xf32, #tpu.memory_space<vmem>>, vector<8x1024xf32>
    %1 = arith.truncf %0 : vector<8x1024xf32> to vector<8x1024xbf16>
    %c0_1 = arith.constant 0 : index
    %c0_2 = arith.constant 0 : index
    %2 = vector.load %arg3[%c0_1, %c0_2] : memref<1024x128xbf16, #tpu.memory_space<vmem>>, vector<1024x128xbf16>
    %cst = arith.constant dense<0.000000e+00> : vector<8x128xf32>
    %3 = tpu.matmul %1, %2, %cst {dimension_numbers = #tpu.dot_dimension_numbers<[1], [0], [0], [1], [0, 0, 1, 1], [], []>} : vector<8x1024xbf16>, vector<1024x128xbf16>, vector<8x128xf32> -> vector<8x128xf32>
    %c0_3 = arith.constant 0 : index
    %c0_4 = arith.constant 0 : index
    %4 = vector.load %arg4[%c0_3, %c0_4] : memref<1x128xf32, #tpu.memory_space<vmem>>, vector<1x128xf32>
    %5 = vector.broadcast %4 : vector<1x128xf32> to vector<8x128xf32>
    %6 = arith.addf %3, %5 : vector<8x128xf32>
    %cst_5 = arith.constant 0.000000e+00 : f32
    %7 = vector.broadcast %cst_5 : f32 to vector<8x128xf32>
    %8 = arith.maximumf %6, %7 : vector<8x128xf32>
    %9 = arith.truncf %8 : vector<8x128xf32> to vector<8x128xbf16>
    %c0_6 = arith.constant 0 : index
    %c0_7 = arith.constant 0 : index
    %10 = vector.load %arg5[%c0_6, %c0_7] : memref<128x256xbf16, #tpu.memory_space<vmem>>, vector<128x256xbf16>
    %cst_8 = arith.constant dense<0.000000e+00> : vector<8x256xf32>
    %11 = tpu.matmul %9, %10, %cst_8 {dimension_numbers = #tpu.dot_dimension_numbers<[1], [0], [0], [1], [0, 0, 1, 1], [], []>} : vector<8x128xbf16>, vector<128x256xbf16>, vector<8x256xf32> -> vector<8x256xf32>
    %c0_9 = arith.constant 0 : index
    %c0_10 = arith.constant 0 : index
    %12 = vector.load %arg6[%c0_9, %c0_10] : memref<1x256xf32, #tpu.memory_space<vmem>>, vector<1x256xf32>
    %13 = vector.broadcast %12 : vector<1x256xf32> to vector<8x256xf32>
    %14 = arith.addf %11, %13 : vector<8x256xf32>
    %15 = vector.extract_strided_slice %14 {offsets = [0, 0], sizes = [8, 128], strides = [1, 1]} : vector<8x256xf32> to vector<8x128xf32>
    %16 = vector.extract_strided_slice %14 {offsets = [0, 128], sizes = [8, 128], strides = [1, 1]} : vector<8x256xf32> to vector<8x128xf32>
    %c0_11 = arith.constant 0 : index
    %c0_12 = arith.constant 0 : index
    %17 = vector.load %arg2[%c0_11, %c0_12] : memref<8x128xf32, #tpu.memory_space<vmem>>, vector<8x128xf32>
    %cst_13 = arith.constant 5.000000e-01 : f32
    %18 = vector.broadcast %cst_13 : f32 to vector<8x128xf32>
    %19 = arith.mulf %18, %16 : vector<8x128xf32>
    %20 = math.exp %19 : vector<8x128xf32>
    %21 = arith.mulf %17, %20 : vector<8x128xf32>
    %22 = arith.addf %21, %15 : vector<8x128xf32>
    %23 = arith.truncf %15 : vector<8x128xf32> to vector<8x128xbf16>
    %c0_14 = arith.constant 0 : index
    %c0_15 = arith.constant 0 : index
    %24 = vector.load %arg12[%c0_14, %c0_15] : memref<8x384xbf16, #tpu.memory_space<vmem>>, vector<8x128xbf16>
    tpu.vector_store %arg12[%c0_14, %c0_15], %23 {strides = array<i32>} : memref<8x384xbf16, #tpu.memory_space<vmem>>, vector<8x128xbf16>,
    %25 = arith.truncf %16 : vector<8x128xf32> to vector<8x128xbf16>
    %c0_16 = arith.constant 0 : index
    %c128 = arith.constant 128 : index
    %26 = vector.load %arg12[%c0_16, %c128] : memref<8x384xbf16, #tpu.memory_space<vmem>>, vector<8x128xbf16>
    tpu.vector_store %arg12[%c0_16, %c128], %25 {strides = array<i32>} : memref<8x384xbf16, #tpu.memory_space<vmem>>, vector<8x128xbf16>,
    %27 = arith.truncf %22 : vector<8x128xf32> to vector<8x128xbf16>
    %c0_17 = arith.constant 0 : index
    %c256 = arith.constant 256 : index
    %28 = vector.load %arg12[%c0_17, %c256] : memref<8x384xbf16, #tpu.memory_space<vmem>>, vector<8x128xbf16>
    tpu.vector_store %arg12[%c0_17, %c256], %27 {strides = array<i32>} : memref<8x384xbf16, #tpu.memory_space<vmem>>, vector<8x128xbf16>,
    %29 = arith.truncf %22 : vector<8x128xf32> to vector<8x128xbf16>
    %c0_18 = arith.constant 0 : index
    %c0_19 = arith.constant 0 : index
    %30 = vector.load %arg7[%c0_18, %c0_19] : memref<128x128xbf16, #tpu.memory_space<vmem>>, vector<128x128xbf16>
    %cst_20 = arith.constant dense<0.000000e+00> : vector<8x128xf32>
    %31 = tpu.matmul %29, %30, %cst_20 {dimension_numbers = #tpu.dot_dimension_numbers<[1], [0], [0], [1], [0, 0, 1, 1], [], []>} : vector<8x128xbf16>, vector<128x128xbf16>, vector<8x128xf32> -> vector<8x128xf32>
    %c0_21 = arith.constant 0 : index
    %c0_22 = arith.constant 0 : index
    %32 = vector.load %arg8[%c0_21, %c0_22] : memref<1x128xf32, #tpu.memory_space<vmem>>, vector<1x128xf32>
    %33 = vector.broadcast %32 : vector<1x128xf32> to vector<8x128xf32>
    %34 = arith.addf %31, %33 : vector<8x128xf32>
    %cst_23 = arith.constant 0.000000e+00 : f32
    %35 = vector.broadcast %cst_23 : f32 to vector<8x128xf32>
    %36 = arith.maximumf %34, %35 : vector<8x128xf32>
    %37 = arith.truncf %36 : vector<8x128xf32> to vector<8x128xbf16>
    %c0_24 = arith.constant 0 : index
    %c0_25 = arith.constant 0 : index
    %38 = vector.load %arg9[%c0_24, %c0_25] : memref<128x1024xbf16, #tpu.memory_space<vmem>>, vector<128x1024xbf16>
    %cst_26 = arith.constant dense<0.000000e+00> : vector<8x1024xf32>
    %39 = tpu.matmul %37, %38, %cst_26 {dimension_numbers = #tpu.dot_dimension_numbers<[1], [0], [0], [1], [0, 0, 1, 1], [], []>} : vector<8x128xbf16>, vector<128x1024xbf16>, vector<8x1024xf32> -> vector<8x1024xf32>
    %c0_27 = arith.constant 0 : index
    %c0_28 = arith.constant 0 : index
    %40 = vector.load %arg10[%c0_27, %c0_28] : memref<1x1024xf32, #tpu.memory_space<vmem>>, vector<1x1024xf32>
    %41 = vector.broadcast %40 : vector<1x1024xf32> to vector<8x1024xf32>
    %42 = arith.addf %39, %41 : vector<8x1024xf32>
    %cst_29 = arith.constant 0.000000e+00 : f32
    %43 = vector.broadcast %cst_29 : f32 to vector<8x1024xf32>
    %44 = arith.subf %43, %42 : vector<8x1024xf32>
    %45 = math.exp %44 : vector<8x1024xf32>
    %cst_30 = arith.constant 1.000000e+00 : f32
    %46 = vector.broadcast %cst_30 : f32 to vector<8x1024xf32>
    %47 = arith.addf %46, %45 : vector<8x1024xf32>
    %48 = tpu.reciprocal %47 {approx = true} : vector<8x1024xf32> -> vector<8x1024xf32>
    %49 = arith.truncf %48 : vector<8x1024xf32> to vector<8x1024xbf16>
    %c0_31 = arith.constant 0 : index
    %c0_32 = arith.constant 0 : index
    %50 = vector.load %arg11[%c0_31, %c0_32] : memref<8x1024xbf16, #tpu.memory_space<vmem>>, vector<8x1024xbf16>
    tpu.vector_store %arg11[%c0_31, %c0_32], %49 {strides = array<i32>} : memref<8x1024xbf16, #tpu.memory_space<vmem>>, vector<8x1024xbf16>,
    return
  }
  func.func @transform_0(%arg0: i32) -> (i32, i32) {
    %c0_i32 = arith.constant 0 : i32
    %c0_i32_0 = arith.constant 0 : i32
    return %arg0, %c0_i32 : i32, i32
  }
  func.func @transform_1(%arg0: i32) -> (i32, i32) {
    %c0_i32 = arith.constant 0 : i32
    %c0_i32_0 = arith.constant 0 : i32
    return %arg0, %c0_i32 : i32, i32
  }
  func.func @transform_2(%arg0: i32) -> (i32, i32) {
    %c0_i32 = arith.constant 0 : i32
    %c0_i32_0 = arith.constant 0 : i32
    %c0_i32_1 = arith.constant 0 : i32
    return %c0_i32, %c0_i32_0 : i32, i32
  }
  func.func @transform_3(%arg0: i32) -> (i32, i32) {
    %c0_i32 = arith.constant 0 : i32
    %c0_i32_0 = arith.constant 0 : i32
    %c0_i32_1 = arith.constant 0 : i32
    return %c0_i32, %c0_i32_0 : i32, i32
  }
  func.func @transform_4(%arg0: i32) -> (i32, i32) {
    %c0_i32 = arith.constant 0 : i32
    %c0_i32_0 = arith.constant 0 : i32
    %c0_i32_1 = arith.constant 0 : i32
    return %c0_i32, %c0_i32_0 : i32, i32
  }
  func.func @transform_5(%arg0: i32) -> (i32, i32) {
    %c0_i32 = arith.constant 0 : i32
    %c0_i32_0 = arith.constant 0 : i32
    %c0_i32_1 = arith.constant 0 : i32
    return %c0_i32, %c0_i32_0 : i32, i32
  }
  func.func @transform_6(%arg0: i32) -> (i32, i32) {
    %c0_i32 = arith.constant 0 : i32
    %c0_i32_0 = arith.constant 0 : i32
    %c0_i32_1 = arith.constant 0 : i32
    return %c0_i32, %c0_i32_0 : i32, i32
  }
  func.func @transform_7(%arg0: i32) -> (i32, i32) {
    %c0_i32 = arith.constant 0 : i32
    %c0_i32_0 = arith.constant 0 : i32
    %c0_i32_1 = arith.constant 0 : i32
    return %c0_i32, %c0_i32_0 : i32, i32
  }
  func.func @transform_8(%arg0: i32) -> (i32, i32) {
    %c0_i32 = arith.constant 0 : i32
    %c0_i32_0 = arith.constant 0 : i32
    %c0_i32_1 = arith.constant 0 : i32
    return %c0_i32, %c0_i32_0 : i32, i32
  }
  func.func @transform_9(%arg0: i32) -> (i32, i32) {
    %c0_i32 = arith.constant 0 : i32
    %c0_i32_0 = arith.constant 0 : i32
    %c0_i32_1 = arith.constant 0 : i32
    return %c0_i32, %c0_i32_0 : i32, i32
  }
  func.func @transform_10(%arg0: i32) -> (i32, i32) {
    %c0_i32 = arith.constant 0 : i32
    %c0_i32_0 = arith.constant 0 : i32
    return %arg0, %c0_i32 : i32, i32
  }
  func.func @transform_11(%arg0: i32) -> (i32, i32) {
    %c0_i32 = arith.constant 0 : i32
    %c0_i32_0 = arith.constant 0 : i32
    return %arg0, %c0_i32 : i32, i32
  }
}

</mosaic_0001>

<bundles_post_ra>
// kernel: vae_forward.1
= control target key start
LH: loop header
LB: loop body
LE: loop exit
PB: predicated region body
PF: predicated region fallthrough
CT: control target
= control target key end

     0   :  { %s3086_s2 = inlined_call_operand.vmem [shape: bf16[1024,128], index: 2, kind: input, shape index: {}]   ;;  %s3087_s3 = inlined_call_operand.vmem [shape: f32[1,128], index: 3, kind: input, shape index: {}]   ;;  %s3088_s0 = inlined_call_operand.vmem [shape: f32[8,1024], index: 0, kind: input, shape index: {}]   ;;  %s3089_s4 = inlined_call_operand.vmem [shape: bf16[128,256], index: 4, kind: input, shape index: {}]   ;;  %s3090_s6 = inlined_call_operand.vmem [shape: bf16[128,128], index: 6, kind: input, shape index: {}]   ;;  %s3091_s7 = inlined_call_operand.vmem [shape: f32[1,128], index: 7, kind: input, shape index: {}]   ;;  %s3092_s5 = inlined_call_operand.vmem [shape: f32[1,256], index: 5, kind: input, shape index: {}]   ;;  %s3093_s8 = inlined_call_operand.vmem [shape: bf16[128,1024], index: 8, kind: input, shape index: {}]   ;;  %s3094_s11 = inlined_call_operand.vmem [shape: bf16[8,384], index: 11, kind: output, shape index: {1}]   ;;  %s3095_s1 = inlined_call_operand.vmem [shape: f32[8,128], index: 1, kind: input, shape index: {}]   ;;  %s3096_s9 = inlined_call_operand.vmem [shape: f32[1,1024], index: 9, kind: input, shape index: {}]   ;;  %s3097_s10 = inlined_call_operand.vmem [shape: bf16[8,1024], index: 10, kind: output, shape index: {0}]  }
   0x1   :  { %v2075_v0 = vld [vmem:[%s3086_s2 + $0x38] sm:$0xff]  ;;  %v2074_v4 = vld [vmem:[%s3086_s2 + $0x30] sm:$0xff]  ;;  %v2073_v8 = vld [vmem:[%s3086_s2 + $0x28] sm:$0xff] }
   0x2   :  { %v2083_v1 = vld [vmem:[%s3086_s2 + $0x78] sm:$0xff]  ;;  %569 = vmatpush.bf16.msra.mxu0 %v2075_v0  ;;  %v2082_v5 = vld [vmem:[%s3086_s2 + $0x70] sm:$0xff]  ;;  %v2081_v9 = vld [vmem:[%s3086_s2 + $0x68] sm:$0xff] }
   0x3   :  { %v2091_v2 = vld [vmem:[%s3086_s2 + $0xb8] sm:$0xff]  ;;  %582 = vmatpush.bf16.msra.mxu1 %v2083_v1  ;;  %v2090_v6 = vld [vmem:[%s3086_s2 + $0xb0] sm:$0xff]  ;;  %v2089_v10 = vld [vmem:[%s3086_s2 + $0xa8] sm:$0xff] }
   0x4   :  { %v2099_v3 = vld [vmem:[%s3086_s2 + $0xf8] sm:$0xff]  ;;  %595 = vmatpush.bf16.msra.mxu2 %v2091_v2  ;;  %v2098_v7 = vld [vmem:[%s3086_s2 + $0xf0] sm:$0xff]  ;;  %v2097_v11 = vld [vmem:[%s3086_s2 + $0xe8] sm:$0xff] }
   0x5   :  { %608 = vmatpush.bf16.msra.mxu3 %v2099_v3  ;;  %v2072_v12 = vld [vmem:[%s3086_s2 + $0x20] sm:$0xff]  ;;  %v2071_v16 = vld [vmem:[%s3086_s2 + $0x18] sm:$0xff]  ;;  %v2070_v20 = vld [vmem:[%s3086_s2 + $0x10] sm:$0xff] }
   0x6   :  { %570 = vmatpush.bf16.msra.mxu0 %v2074_v4  ;;  %v2080_v13 = vld [vmem:[%s3086_s2 + $0x60] sm:$0xff]  ;;  %v2079_v17 = vld [vmem:[%s3086_s2 + $0x58] sm:$0xff]  ;;  %v2078_v21 = vld [vmem:[%s3086_s2 + $0x50] sm:$0xff] }
   0x7   :  { %583 = vmatpush.bf16.msra.mxu1 %v2082_v5  ;;  %v2088_v14 = vld [vmem:[%s3086_s2 + $0xa0] sm:$0xff]  ;;  %v2087_v18 = vld [vmem:[%s3086_s2 + $0x98] sm:$0xff]  ;;  %v2086_v22 = vld [vmem:[%s3086_s2 + $0x90] sm:$0xff] }
   0x8   :  { %596 = vmatpush.bf16.msra.mxu2 %v2090_v6  ;;  %v2096_v15 = vld [vmem:[%s3086_s2 + $0xe0] sm:$0xff]  ;;  %v2095_v19 = vld [vmem:[%s3086_s2 + $0xd8] sm:$0xff]  ;;  %v2094_v23 = vld [vmem:[%s3086_s2 + $0xd0] sm:$0xff] }
   0x9   :  { %609 = vmatpush.bf16.msra.mxu3 %v2098_v7  ;;  %v2069_v24 = vld [vmem:[%s3086_s2 + $0x8] sm:$0xff]  ;;  %v2068_v28 = vld [vmem:[%s3086_s2] sm:$0xff]  ;;  %v2107_v32 = vld [vmem:[%s3086_s2 + $0x138] sm:$0xff] }
   0xa   :  { %571 = vmatpush.bf16.msra.mxu0 %v2073_v8  ;;  %v2077_v25 = vld [vmem:[%s3086_s2 + $0x48] sm:$0xff]  ;;  %v2076_v29 = vld [vmem:[%s3086_s2 + $0x40] sm:$0xff]  ;;  %v39_v33 = vld [vmem:[%s3088_s0 + $0x10] sm:$0xff] }
   0xb   :  { %584 = vmatpush.bf16.msra.mxu1 %v2081_v9  ;;  %v2085_v26 = vld [vmem:[%s3086_s2 + $0x88] sm:$0xff]  ;;  %v2084_v30 = vld [vmem:[%s3086_s2 + $0x80] sm:$0xff]  ;;  %v2115_v35 = vld [vmem:[%s3086_s2 + $0x178] sm:$0xff]  ;;  %v47_v40 = vpack.c.bf16 %v39_v33, %v39_v33 }
   0xc   :  { %597 = vmatpush.bf16.msra.mxu2 %v2089_v10  ;;  %v2093_v27 = vld [vmem:[%s3086_s2 + $0xc8] sm:$0xff]  ;;  %v2092_v31 = vld [vmem:[%s3086_s2 + $0xc0] sm:$0xff]  ;;  %v40_v36 = vld [vmem:[%s3088_s0 + $0x18] sm:$0xff] }
   0xd   :  { %610 = vmatpush.bf16.msra.mxu3 %v2097_v11  ;;  %v37_v34 = vld [vmem:[%s3088_s0] sm:$0xff]  ;;  %v38_v37 = vld [vmem:[%s3088_s0 + $0x8] sm:$0xff]  ;;  %v2123_v38 = vld [vmem:[%s3086_s2 + $0x1b8] sm:$0xff]  ;;  %v48_v42 = vpack.c.bf16 %v40_v36, %v40_v36 }
   0xe   :  { %572 = vmatpush.bf16.msra.mxu0 %v2072_v12  ;;  %v2131_v39 = vld [vmem:[%s3086_s2 + $0x1f8] sm:$0xff]  ;;  %v45_v41 = vpack.c.bf16 %v37_v34, %v37_v34  ;;  %v46_v43 = vpack.c.bf16 %v38_v37, %v38_v37  ;;  %v2106_v44 = vld [vmem:[%s3086_s2 + $0x130] sm:$0xff]  ;;  %v2105_v48 = vld [vmem:[%s3086_s2 + $0x128] sm:$0xff] }
   0xf   :  { %585 = vmatpush.bf16.msra.mxu1 %v2080_v13  ;;  %v2114_v45 = vld [vmem:[%s3086_s2 + $0x170] sm:$0xff]  ;;  %v2113_v49 = vld [vmem:[%s3086_s2 + $0x168] sm:$0xff]  ;;  %v2104_v52 = vld [vmem:[%s3086_s2 + $0x120] sm:$0xff] }
  0x10   :  { %598 = vmatpush.bf16.msra.mxu2 %v2088_v14  ;;  %v2122_v46 = vld [vmem:[%s3086_s2 + $0x1b0] sm:$0xff]  ;;  %v2121_v50 = vld [vmem:[%s3086_s2 + $0x1a8] sm:$0xff]  ;;  %v2112_v53 = vld [vmem:[%s3086_s2 + $0x160] sm:$0xff] }
  0x11   :  { %611 = vmatpush.bf16.msra.mxu3 %v2096_v15  ;;  %v2130_v47 = vld [vmem:[%s3086_s2 + $0x1f0] sm:$0xff]  ;;  %v2129_v51 = vld [vmem:[%s3086_s2 + $0x1e8] sm:$0xff]  ;;  %v2120_v54 = vld [vmem:[%s3086_s2 + $0x1a0] sm:$0xff] }
  0x12   :  { %573 = vmatpush.bf16.msra.mxu0 %v2071_v16  ;;  %v2128_v55 = vld [vmem:[%s3086_s2 + $0x1e0] sm:$0xff]  ;;  %v2103_v56 = vld [vmem:[%s3086_s2 + $0x118] sm:$0xff]  ;;  %v2102_v60 = vld [vmem:[%s3086_s2 + $0x110] sm:$0xff] }
  0x13   :  { %586 = vmatpush.bf16.msra.mxu1 %v2079_v17  ;;  %v2111_v57 = vld [vmem:[%s3086_s2 + $0x158] sm:$0xff]  ;;  %v2110_v61 = vld [vmem:[%s3086_s2 + $0x150] sm:$0xff]  ;;  %v2101_v0 = vld [vmem:[%s3086_s2 + $0x108] sm:$0xff] }
  0x14   :  { %599 = vmatpush.bf16.msra.mxu2 %v2087_v18  ;;  %v2119_v58 = vld [vmem:[%s3086_s2 + $0x198] sm:$0xff]  ;;  %v2118_v62 = vld [vmem:[%s3086_s2 + $0x190] sm:$0xff]  ;;  %v2109_v1 = vld [vmem:[%s3086_s2 + $0x148] sm:$0xff] }
  0x15   :  { %612 = vmatpush.bf16.msra.mxu3 %v2095_v19  ;;  %v2127_v59 = vld [vmem:[%s3086_s2 + $0x1d8] sm:$0xff]  ;;  %v2126_v63 = vld [vmem:[%s3086_s2 + $0x1d0] sm:$0xff]  ;;  %v2117_v2 = vld [vmem:[%s3086_s2 + $0x188] sm:$0xff] }
  0x16   :  { %574 = vmatpush.bf16.msra.mxu0 %v2070_v20  ;;  %v2125_v3 = vld [vmem:[%s3086_s2 + $0x1c8] sm:$0xff]  ;;  %v2100_v4 = vld [vmem:[%s3086_s2 + $0x100] sm:$0xff]  ;;  %v43_v10 = vld [vmem:[%s3088_s0 + $0x30] sm:$0xff] }
  0x17   :  { %587 = vmatpush.bf16.msra.mxu1 %v2078_v21  ;;  %v2108_v5 = vld [vmem:[%s3086_s2 + $0x140] sm:$0xff]  ;;  %v42_v8 = vld [vmem:[%s3088_s0 + $0x28] sm:$0xff]  ;;  %v44_v11 = vld [vmem:[%s3088_s0 + $0x38] sm:$0xff]  ;;  %v51_v14 = vpack.c.bf16 %v43_v10, %v43_v10 }
  0x18   :  { %600 = vmatpush.bf16.msra.mxu2 %v2086_v22  ;;  %v2116_v6 = vld [vmem:[%s3086_s2 + $0x180] sm:$0xff]  ;;  %v50_v13 = vpack.c.bf16 %v42_v8, %v42_v8  ;;  %v52_v15 = vpack.c.bf16 %v44_v11, %v44_v11  ;;  %v1774_v16 = vld [vmem:[%s3089_s4 + $0x70] sm:$0xf]  ;;  %v2147_v17 = vld [vmem:[%s3089_s4 + $0x74] sm:$0xf0] }
  0x19   :  { %613 = vmatpush.bf16.msra.mxu3 %v2094_v23  ;;  %v41_v7 = vld [vmem:[%s3088_s0 + $0x20] sm:$0xff]  ;;  %v2146_v18 = vld [vmem:[%s3089_s4 + $0x74] sm:$0xf]  ;;  %v1775_v19 = vor.u32 %v2147_v17, %v1774_v16  ;;  %v1776_v20 = vld [vmem:[%s3089_s4 + $0x78] sm:$0xf0] }
  0x1a   :  { %575 = vmatpush.bf16.msra.mxu0 %v2069_v24  ;;  %v2124_v9 = vld [vmem:[%s3086_s2 + $0x1c0] sm:$0xff]  ;;  %v49_v12 = vpack.c.bf16 %v41_v7, %v41_v7  ;;  %v2145_v22 = vld [vmem:[%s3089_s4 + $0x64] sm:$0xf0]  ;;  %v1779_v23 = vor.u32 %v2146_v18, %v1776_v20  ;;  %v1752_v37 = vld [vmem:[%s3089_s4 + $0x48] sm:$0xf0] }
  0x1b   :  { %588 = vmatpush.bf16.msra.mxu1 %v2077_v25  ;;  %v1766_v21 = vld [vmem:[%s3089_s4 + $0x60] sm:$0xf]  ;;  %v2144_v24 = vld [vmem:[%s3089_s4 + $0x64] sm:$0xf]  ;;  %v1768_v25 = vld [vmem:[%s3089_s4 + $0x68] sm:$0xf0] }
  0x1c   :  { %601 = vmatpush.bf16.msra.mxu2 %v2085_v26  ;;  %v1767_v26 = vor.u32 %v2145_v22, %v1766_v21  ;;  %v1750_v34 = vld [vmem:[%s3089_s4 + $0x40] sm:$0xf]  ;;  %v2140_v36 = vld [vmem:[%s3089_s4 + $0x44] sm:$0xf]  ;;  %v2155_v7 = vld [vmem:[%s3090_s6 + $0x38] sm:$0xff] }
  0x1d   :  { %614 = vmatpush.bf16.msra.mxu3 %v2093_v27  ;;  %v1771_v27 = vor.u32 %v2144_v24, %v1768_v25  ;;  %v2154_v10 = vld [vmem:[%s3090_s6 + $0x30] sm:$0xff] }
  0x1e   :  { %576 = vmatpush.bf16.msra.mxu0 %v2068_v28  ;;  %v1758_v28 = vld [vmem:[%s3089_s4 + $0x50] sm:$0xf] }
  0x1f   :  { %589 = vmatpush.bf16.msra.mxu1 %v2076_v29  ;;  %v2143_v29 = vld [vmem:[%s3089_s4 + $0x54] sm:$0xf0] }
  0x20   :  { %602 = vmatpush.bf16.msra.mxu2 %v2084_v30  ;;  %v2142_v30 = vld [vmem:[%s3089_s4 + $0x54] sm:$0xf] }
  0x21   :  { %615 = vmatpush.bf16.msra.mxu3 %v2092_v31  ;;  %577 = vmatmul.bf16.vlgmr.msra.gmra.mxu0 %v45_v41  ;;  %v1759_v31 = vor.u32 %v2143_v29, %v1758_v28  ;;  %v2139_v41 = vld [vmem:[%s3089_s4 + $0x34] sm:$0xf0] }
  0x22   :  { %621 = vmatpush.bf16.msrb.mxu0 %v2107_v32  ;;  %590 = vmatmul.bf16.vlgmr.msra.gmra.mxu1 %v46_v43  ;;  %v1760_v32 = vld [vmem:[%s3089_s4 + $0x58] sm:$0xf0] }
  0x23   :  { %634 = vmatpush.bf16.msrb.mxu1 %v2115_v35  ;;  %603 = vmatmul.bf16.vlgmr.msra.gmra.mxu2 %v47_v40  ;;  %v1763_v33 = vor.u32 %v2142_v30, %v1760_v32  ;;  %v2141_v35 = vld [vmem:[%s3089_s4 + $0x44] sm:$0xf0]  ;;  %v1742_v40 = vld [vmem:[%s3089_s4 + $0x30] sm:$0xf]  ;;  %v2152_v30 = vld [vmem:[%s3090_s6 + $0x20] sm:$0xff] }
  0x24   :  { %647 = vmatpush.bf16.msrb.mxu2 %v2123_v38  ;;  %616 = vmatmul.bf16.vlgmr.msra.gmra.mxu3 %v48_v42  ;;  %v1751_v38 = vor.u32 %v2141_v35, %v1750_v34  ;;  %v2138_v42 = vld [vmem:[%s3089_s4 + $0x34] sm:$0xf]  ;;  %v1743_v43 = vor.u32 %v2139_v41, %v1742_v40  ;;  %v2148_v34 = vld [vmem:[%s3090_s6] sm:$0xff] }
  0x25   :  { %660 = vmatpush.bf16.msrb.mxu3 %v2131_v39  ;;  %v1755_v39 = vor.u32 %v2140_v36, %v1752_v37  ;;  %v2150_v32 = vld [vmem:[%s3090_s6 + $0x10] sm:$0xff]  ;;  %v2663_v35 = vld [vmem:[%s3092_s5] sm:$0x3]  ;;  %v2212_v40 = vld [vmem:[%s3093_s8 + $0x1c4] sm:$0xf] }
  0x26   :  { %622 = vmatpush.bf16.msrb.mxu0 %v2106_v44  ;;  %v1744_v44 = vld [vmem:[%s3089_s4 + $0x38] sm:$0xf0]  ;;  %v693_v36 = vperm.slane %v2663_v35, 0  ;;  %v694_v37 = vperm.slane %v2663_v35, 1 }
  0x27   :  { %635 = vmatpush.bf16.msrb.mxu1 %v2114_v45  ;;  %v1747_v45 = vor.u32 %v2138_v42, %v1744_v44  ;;  %v2040_v42 = vld [vmem:[%s3093_s8 + $0x1e0] sm:$0xf0]  ;;  %v2217_v44 = vld [vmem:[%s3093_s8 + $0x1e4] sm:$0xf0] }
  0x28   :  { %648 = vmatpush.bf16.msrb.mxu2 %v2122_v46  ;;  %v1734_v46 = vld [vmem:[%s3089_s4 + $0x20] sm:$0xf] }
  0x29   :  { %661 = vmatpush.bf16.msrb.mxu3 %v2130_v47  ;;  %v2137_v47 = vld [vmem:[%s3089_s4 + $0x24] sm:$0xf0] }
  0x2a   :  { %623 = vmatpush.bf16.msrb.mxu0 %v2105_v48  ;;  %v2136_v48 = vld [vmem:[%s3089_s4 + $0x24] sm:$0xf] }
  0x2b   :  { %636 = vmatpush.bf16.msrb.mxu1 %v2113_v49 }
  0x2c   :  { %649 = vmatpush.bf16.msrb.mxu2 %v2121_v50  ;;  %v1735_v50 = vor.u32 %v2137_v47, %v1734_v46  ;;  %v2213_v47 = vld [vmem:[%s3093_s8 + $0x1cc] sm:$0xf] }
  0x2d   :  { %662 = vmatpush.bf16.msrb.mxu3 %v2129_v51  ;;  %v1736_v51 = vld [vmem:[%s3089_s4 + $0x28] sm:$0xf0] }
  0x2e   :  { %624 = vmatpush.bf16.msrb.mxu0 %v2104_v52 }
  0x2f   :  { %637 = vmatpush.bf16.msrb.mxu1 %v2112_v53  ;;  %v1739_v53 = vor.u32 %v2136_v48, %v1736_v51  ;;  %v2048_v48 = vld [vmem:[%s3093_s8 + $0x1e8] sm:$0xf0]  ;;  %v2208_v51 = vld [vmem:[%s3093_s8 + $0x19c] sm:$0xf0] }
  0x30   :  { %650 = vmatpush.bf16.msrb.mxu2 %v2120_v54  ;;  %v1726_v54 = vld [vmem:[%s3089_s4 + $0x10] sm:$0xf] }
  0x31   :  { %663 = vmatpush.bf16.msrb.mxu3 %v2128_v55  ;;  %v2135_v55 = vld [vmem:[%s3089_s4 + $0x14] sm:$0xf0] }
  0x32   :  { %625 = vmatpush.bf16.msrb.mxu0 %v2103_v56  ;;  %v2134_v56 = vld [vmem:[%s3089_s4 + $0x14] sm:$0xf] }
  0x33   :  { %638 = vmatpush.bf16.msrb.mxu1 %v2111_v57  ;;  %v1727_v57 = vor.u32 %v2135_v55, %v1726_v54 }
  0x34   :  { %651 = vmatpush.bf16.msrb.mxu2 %v2119_v58  ;;  %v1728_v58 = vld [vmem:[%s3089_s4 + $0x18] sm:$0xf0] }
  0x35   :  { %664 = vmatpush.bf16.msrb.mxu3 %v2127_v59  ;;  %v1731_v59 = vor.u32 %v2134_v56, %v1728_v58  ;;  %v2014_v56 = vld [vmem:[%s3093_s8 + $0x188] sm:$0xf]  ;;  %v2205_v58 = vld [vmem:[%s3093_s8 + $0x18c] sm:$0xf] }
  0x36   :  { %626 = vmatpush.bf16.msrb.mxu0 %v2102_v60 }
  0x37   :  { %639 = vmatpush.bf16.msrb.mxu1 %v2110_v61 }
  0x38   :  { %652 = vmatpush.bf16.msrb.mxu2 %v2118_v62  ;;  %v1718_v62 = vld [vmem:[%s3089_s4] sm:$0xf] }
  0x39   :  { %665 = vmatpush.bf16.msrb.mxu3 %v2126_v63  ;;  %v2133_v63 = vld [vmem:[%s3089_s4 + $0x4] sm:$0xf0] }
  0x3a   :  { %627 = vmatpush.bf16.msrb.mxu0 %v2101_v0  ;;  %v2132_v0 = vld [vmem:[%s3089_s4 + $0x4] sm:$0xf] }
  0x3b   :  { %640 = vmatpush.bf16.msrb.mxu1 %v2109_v1 }
  0x3c   :  { %653 = vmatpush.bf16.msrb.mxu2 %v2117_v2  ;;  %v1719_v2 = vor.u32 %v2133_v63, %v1718_v62  ;;  %v2200_v62 = vld [vmem:[%s3093_s8 + $0x15c] sm:$0xf0] }
  0x3d   :  { %666 = vmatpush.bf16.msrb.mxu3 %v2125_v3  ;;  %v1720_v3 = vld [vmem:[%s3089_s4 + $0x8] sm:$0xf0] }
  0x3e   :  { %628 = vmatpush.bf16.msrb.mxu0 %v2100_v4 }
  0x3f   :  { %641 = vmatpush.bf16.msrb.mxu1 %v2108_v5  ;;  %v1723_v5 = vor.u32 %v2132_v0, %v1720_v3  ;;  %v2196_v0 = vld [vmem:[%s3093_s8 + $0x144] sm:$0xf] }
  0x40   :  { %654 = vmatpush.bf16.msrb.mxu2 %v2116_v6  ;;  %v2225_v6 = vld [vmem:[%s3087_s3] ss:$0 sm:$0xff] }
  0x41   :  { %667 = vmatpush.bf16.msrb.mxu3 %v2124_v9  ;;  %629 = vmatmul.bf16.vlgmr.msrb.gmra.mxu0 %v49_v12  ;;  %v2153_v12 = vld [vmem:[%s3090_s6 + $0x28] sm:$0xff] }
  0x42   :  { %642 = vmatmul.bf16.vlgmr.msrb.gmra.mxu1 %v50_v13  ;;  %777 = vmatpush.bf16.msra.mxu0 %v1775_v19 }
  0x43   :  { %655 = vmatmul.bf16.vlgmr.msrb.gmra.mxu2 %v51_v14  ;;  %790 = vmatpush.bf16.msra.mxu1 %v1779_v23 }
  0x44   :  { %668 = vmatmul.bf16.vlgmr.msrb.gmra.mxu3 %v52_v15  ;;  %883 = vmatpush.bf16.msra.mxu2 %v2155_v7 }
  0x46   :  { %778 = vmatpush.bf16.msra.mxu0 %v1767_v26 }
  0x47   :  { %791 = vmatpush.bf16.msra.mxu1 %v1771_v27 }
  0x48   :  { %884 = vmatpush.bf16.msra.mxu2 %v2154_v10  ;;  %v2192_v10 = vld [vmem:[%s3093_s8 + $0x11c] sm:$0xf0] }
  0x4a   :  { %779 = vmatpush.bf16.msra.mxu0 %v1759_v31  ;;  %v2151_v31 = vld [vmem:[%s3090_s6 + $0x18] sm:$0xff] }
  0x4b   :  { %792 = vmatpush.bf16.msra.mxu1 %v1763_v33  ;;  %v2149_v33 = vld [vmem:[%s3090_s6 + $0x8] sm:$0xff] }
  0x4c   :  { %885 = vmatpush.bf16.msra.mxu2 %v2153_v12 }
  0x4e   :  { %780 = vmatpush.bf16.msra.mxu0 %v1751_v38  ;;  %v2038_v38 = vld [vmem:[%s3093_s8 + $0x1c0] sm:$0xf] }
  0x4f   :  { %793 = vmatpush.bf16.msra.mxu1 %v1755_v39  ;;  %v2216_v39 = vld [vmem:[%s3093_s8 + $0x1dc] sm:$0xf0] }
  0x50   :  { %886 = vmatpush.bf16.msra.mxu2 %v2152_v30  ;;  %v2039_v41 = vor.u32 %v2216_v39, %v2038_v38  ;;  %v1918_v30 = vld [vmem:[%s3093_s8 + $0xc8] sm:$0xf] }
  0x52   :  { %781 = vmatpush.bf16.msra.mxu0 %v1743_v43  ;;  %v2046_v43 = vld [vmem:[%s3093_s8 + $0x1c8] sm:$0xf]  ;;  %1300 = vmatpush.bf16.msra.mxu3 %v2039_v41  ;;  %v2172_v41 = vld [vmem:[%s3093_s8 + $0x84] sm:$0xf] }
  0x53   :  { %794 = vmatpush.bf16.msra.mxu1 %v1747_v45  ;;  %v2043_v45 = vor.u32 %v2212_v40, %v2040_v42  ;;  %v2047_v46 = vor.u32 %v2217_v44, %v2046_v43  ;;  %v2176_v40 = vld [vmem:[%s3093_s8 + $0x9c] sm:$0xf0]  ;;  %v1880_v42 = vld [vmem:[%s3093_s8 + $0xa0] sm:$0xf0] }
  0x54   :  { %887 = vmatpush.bf16.msra.mxu2 %v2151_v31  ;;  %v2185_v31 = vld [vmem:[%s3093_s8 + $0xe4] sm:$0xf0] }
  0x55   :  { %v1919_v39 = vor.u32 %v2185_v31, %v1918_v30  ;;  %v2022_v30 = vld [vmem:[%s3093_s8 + $0x190] sm:$0xf] }
  0x56   :  { %782 = vmatpush.bf16.msra.mxu0 %v1735_v50  ;;  %v2051_v50 = vor.u32 %v2213_v47, %v2048_v48  ;;  %v2173_v47 = vld [vmem:[%s3093_s8 + $0x8c] sm:$0xf]  ;;  %v2210_v31 = vld [vmem:[%s3093_s8 + $0x1ac] sm:$0xf0] }
  0x57   :  { %795 = vmatpush.bf16.msra.mxu1 %v1739_v53  ;;  %v2008_v53 = vld [vmem:[%s3093_s8 + $0x1a0] sm:$0xf0]  ;;  %v1888_v48 = vld [vmem:[%s3093_s8 + $0xa8] sm:$0xf0] }
  0x58   :  { %888 = vmatpush.bf16.msra.mxu2 %v2150_v32  ;;  %v2181_v32 = vld [vmem:[%s3093_s8 + $0xcc] sm:$0xf] }
  0x5a   :  { %783 = vmatpush.bf16.msra.mxu0 %v1727_v57  ;;  %v2209_v57 = vld [vmem:[%s3093_s8 + $0x1a4] sm:$0xf0] }
  0x5b   :  { %796 = vmatpush.bf16.msra.mxu1 %v1731_v59  ;;  %v2015_v59 = vor.u32 %v2209_v57, %v2014_v56  ;;  %v2164_v56 = vld [vmem:[%s3093_s8 + $0x44] sm:$0xf]  ;;  %v1891_v57 = vor.u32 %v2173_v47, %v1888_v48  ;;  %v1992_v48 = vld [vmem:[%s3093_s8 + $0x170] sm:$0xf0] }
  0x5c   :  { %889 = vmatpush.bf16.msra.mxu2 %v2149_v33  ;;  %v1920_v33 = vld [vmem:[%s3093_s8 + $0xe8] sm:$0xf0] }
  0x5d   :  { %v1923_v44 = vor.u32 %v2181_v32, %v1920_v33  ;;  %v2206_v32 = vld [vmem:[%s3093_s8 + $0x194] sm:$0xf] }
  0x5e   :  { %784 = vmatpush.bf16.msra.mxu0 %v1719_v2  ;;  %v1982_v2 = vld [vmem:[%s3093_s8 + $0x148] sm:$0xf] }
  0x5f   :  { %797 = vmatpush.bf16.msra.mxu1 %v1723_v5  ;;  %v2197_v5 = vld [vmem:[%s3093_s8 + $0x14c] sm:$0xf] }
  0x60   :  { %890 = vmatpush.bf16.msra.mxu2 %v2148_v34 }
  0x62   :  { %1313 = vmatpush.bf16.msrb.mxu0 %v2043_v45  ;;  %v1886_v45 = vld [vmem:[%s3093_s8 + $0x88] sm:$0xf] }
  0x63   :  { %1326 = vmatpush.bf16.msrb.mxu1 %v2047_v46  ;;  %v2177_v46 = vld [vmem:[%s3093_s8 + $0xa4] sm:$0xf0] }
  0x64   :  { %1339 = vmatpush.bf16.msrb.mxu2 %v2051_v50 }
  0x67   :  { %1327 = vmatpush.bf16.msrb.mxu1 %v2015_v59  ;;  %v1854_v59 = vld [vmem:[%s3093_s8 + $0x48] sm:$0xf] }
  0x9e   :  { %v578_v49 = vpop.f32.mrf.mxu0 }
  0x9f   :  { %v591_v52 = vpop.f32.mrf.mxu1  ;;  %v579_v11 = vadd.f32 %v2225_v6, %v578_v49  ;;  %v2006_v49 = vld [vmem:[%s3093_s8 + $0x180] sm:$0xf]  ;;  %v1984_v6 = vld [vmem:[%s3093_s8 + $0x168] sm:$0xf0] }
  0xa0   :  { %v2007_v54 = vor.u32 %v2208_v51, %v2006_v49  ;;  %v1987_v12 = vor.u32 %v2197_v5, %v1984_v6  ;;  %v2156_v5 = vld [vmem:[%s3093_s8 + $0x4] sm:$0xf] }
  0xa1   :  { %v592_v13 = vadd.f32 %v591_v52, %v579_v11  ;;  %v2204_v52 = vld [vmem:[%s3093_s8 + $0x184] sm:$0xf] }
  0xa2   :  { %v2011_v55 = vor.u32 %v2204_v52, %v2008_v53  ;;  %1301 = vmatpush.bf16.msra.mxu3 %v2007_v54  ;;  %v2188_v11 = vld [vmem:[%s3093_s8 + $0x104] sm:$0xf]  ;;  %v1883_v52 = vor.u32 %v2172_v41, %v1880_v42  ;;  %v1887_v53 = vor.u32 %v2177_v46, %v1886_v45  ;;  %v1846_v54 = vld [vmem:[%s3093_s8 + $0x40] sm:$0xf]  ;;  %v2202_v45 = vld [vmem:[%s3093_s8 + $0x16c] sm:$0xf0] }
  0xa3   :  { %v1816_v6 = vld [vmem:[%s3093_s8 + $0x20] sm:$0xf0]  ;;  %v2198_v46 = vld [vmem:[%s3093_s8 + $0x154] sm:$0xf] }
  0xa4   :  { %1314 = vmatpush.bf16.msrb.mxu0 %v2011_v55  ;;  %v2168_v55 = vld [vmem:[%s3093_s8 + $0x5c] sm:$0xf0] }
  0xa6   :  { %v604_v60 = vpop.f32.mrf.mxu2  ;;  %v580_v1 = vpop.f32.mrf.mxu0 }
  0xa7   :  { %v617_v61 = vpop.f32.mrf.mxu3  ;;  %v593_v4 = vpop.f32.mrf.mxu1  ;;  %v605_v14 = vadd.f32 %v604_v60, %v592_v13  ;;  %v2016_v60 = vld [vmem:[%s3093_s8 + $0x1a8] sm:$0xf0]  ;;  %v1976_v1 = vld [vmem:[%s3093_s8 + $0x160] sm:$0xf0] }
  0xa8   :  { %v2019_v63 = vor.u32 %v2205_v58, %v2016_v60  ;;  %v2201_v4 = vld [vmem:[%s3093_s8 + $0x164] sm:$0xf0]  ;;  %v1979_v7 = vor.u32 %v2196_v0, %v1976_v1  ;;  %v1944_v13 = vld [vmem:[%s3093_s8 + $0x120] sm:$0xf0]  ;;  %v1847_v0 = vor.u32 %v2168_v55, %v1846_v54  ;;  %v1814_v1 = vld [vmem:[%s3093_s8] sm:$0xf] }
  0xa9   :  { %v618_v15 = vadd.f32 %v617_v61, %v605_v14  ;;  %v1974_v61 = vld [vmem:[%s3093_s8 + $0x140] sm:$0xf]  ;;  %v1950_v14 = vld [vmem:[%s3093_s8 + $0x108] sm:$0xf]  ;;  %v1848_v58 = vld [vmem:[%s3093_s8 + $0x60] sm:$0xf0] }
  0xaa   :  { %v1975_v3 = vor.u32 %v2200_v62, %v1974_v61  ;;  %1340 = vmatpush.bf16.msrb.mxu2 %v2019_v63  ;;  %1315 = vmatpush.bf16.msrb.mxu0 %v1979_v7  ;;  %v2169_v60 = vld [vmem:[%s3093_s8 + $0x64] sm:$0xf0]  ;;  %v2165_v61 = vld [vmem:[%s3093_s8 + $0x4c] sm:$0xf]  ;;  %v803_v63 = vld [vmem:[%s3095_s1] sm:$0xff] }
  0xab   :  { %v1856_v62 = vld [vmem:[%s3093_s8 + $0x68] sm:$0xf0]  ;;  %v2000_v54 = vld [vmem:[%s3093_s8 + $0x178] sm:$0xf0] }
  0xac   :  { %1302 = vmatpush.bf16.msra.mxu3 %v1975_v3  ;;  %v1855_v3 = vor.u32 %v2169_v60, %v1854_v59  ;;  %v1960_v60 = vld [vmem:[%s3093_s8 + $0x130] sm:$0xf0] }
  0xae   :  { %v606_v8 = vpop.f32.mrf.mxu2  ;;  %1341 = vmatpush.bf16.msrb.mxu2 %v1987_v12 }
  0xaf   :  { %v619_v9 = vpop.f32.mrf.mxu3  ;;  %v1983_v8 = vor.u32 %v2201_v4, %v1982_v2  ;;  %v1851_v2 = vor.u32 %v2164_v56, %v1848_v58  ;;  %v2160_v4 = vld [vmem:[%s3093_s8 + $0x1c] sm:$0xf0]  ;;  %v1958_v56 = vld [vmem:[%s3093_s8 + $0x110] sm:$0xf]  ;;  %v2190_v58 = vld [vmem:[%s3093_s8 + $0x114] sm:$0xf] }
  0xb0   :  { %v1942_v9 = vld [vmem:[%s3093_s8 + $0x100] sm:$0xf] }
  0xb1   :  { %1328 = vmatpush.bf16.msrb.mxu1 %v1983_v8  ;;  %v1859_v8 = vor.u32 %v2165_v61, %v1856_v62  ;;  %v1966_v61 = vld [vmem:[%s3093_s8 + $0x118] sm:$0xf] }
  0xb2   :  { %v2195_v62 = vld [vmem:[%s3093_s8 + $0x134] sm:$0xf0] }
  0xbe   :  { %v630_v16 = vpop.f32.mrf.mxu0 }
  0xbf   :  { %v643_v17 = vpop.f32.mrf.mxu1  ;;  %v631_v18 = vadd.f32 %v630_v16, %v618_v15  ;;  %v2193_v15 = vld [vmem:[%s3093_s8 + $0x124] sm:$0xf0]  ;;  %v2189_v16 = vld [vmem:[%s3093_s8 + $0x10c] sm:$0xf] }
  0xc1   :  { %v644_v19 = vadd.f32 %v643_v17, %v631_v18  ;;  %v1952_v17 = vld [vmem:[%s3093_s8 + $0x128] sm:$0xf0]  ;;  %v1943_v18 = vor.u32 %v2192_v10, %v1942_v9  ;;  %v1822_v9 = vld [vmem:[%s3093_s8 + $0x8] sm:$0xf] }
  0xc2   :  { %v2161_v10 = vld [vmem:[%s3093_s8 + $0x24] sm:$0xf0] }
  0xc3   :  { %1303 = vmatpush.bf16.msra.mxu3 %v1943_v18  ;;  %v2056_v18 = vld [vmem:[%s3093_s8 + $0x1f0] sm:$0xf0] }
  0xc6   :  { %v656_v20 = vpop.f32.mrf.mxu2  ;;  %v632_v23 = vpop.f32.mrf.mxu0 }
  0xc7   :  { %v669_v21 = vpop.f32.mrf.mxu3  ;;  %v657_v22 = vadd.f32 %v656_v20, %v644_v19  ;;  %v645_v24 = vpop.f32.mrf.mxu1  ;;  %v1910_v23 = vld [vmem:[%s3093_s8 + $0xc0] sm:$0xf] }
  0xc8   :  { %v2184_v24 = vld [vmem:[%s3093_s8 + $0xdc] sm:$0xf0] }
  0xc9   :  { %v670_v25 = vadd.f32 %v669_v21, %v657_v22  ;;  %v1947_v21 = vor.u32 %v2188_v11, %v1944_v13  ;;  %v1951_v22 = vor.u32 %v2193_v15, %v1950_v14  ;;  %v2157_v11 = vld [vmem:[%s3093_s8 + $0xc] sm:$0xf]  ;;  %v2054_v14 = vld [vmem:[%s3093_s8 + $0x1d0] sm:$0xf] }
  0xca   :  { %v1824_v13 = vld [vmem:[%s3093_s8 + $0x28] sm:$0xf0]  ;;  %v2218_v15 = vld [vmem:[%s3093_s8 + $0x1ec] sm:$0xf0] }
  0xcb   :  { %v673_v26 = vmax.f32 %v670_v25, 0.0  ;;  %v2180_v25 = vld [vmem:[%s3093_s8 + $0xc4] sm:$0xf]  ;;  %1316 = vmatpush.bf16.msrb.mxu0 %v1947_v21  ;;  %1329 = vmatpush.bf16.msrb.mxu1 %v1951_v22  ;;  %v1819_v21 = vor.u32 %v2156_v5, %v1816_v6  ;;  %v2219_v22 = vld [vmem:[%s3093_s8 + $0x1f4] sm:$0xf0] }
  0xcc   :  { %v2186_v5 = vld [vmem:[%s3093_s8 + $0xec] sm:$0xf0]  ;;  %v2182_v6 = vld [vmem:[%s3093_s8 + $0xd4] sm:$0xf] }
  0xcd   :  { %v674_v27 = vpack.c.bf16 %v673_v26, %v673_v26 }
  0xce   :  { %v658_v28 = vpop.f32.mrf.mxu2 }
  0xcf   :  { %v671_v29 = vpop.f32.mrf.mxu3  ;;  %785 = vmatmul.bf16.vlgmr.msra.gmra.mxu0 %v674_v27  ;;  %798 = vmatmul.bf16.vlgmr.msra.gmra.mxu1 %v674_v27  ;;  %v1955_v28 = vor.u32 %v2189_v16, %v1952_v17  ;;  %v1815_v16 = vor.u32 %v2160_v4, %v1814_v1  ;;  %v2214_v17 = vld [vmem:[%s3093_s8 + $0x1d4] sm:$0xf]  ;;  %v2191_v1 = vld [vmem:[%s3093_s8 + $0x11c] sm:$0xf]  ;;  %v1926_v4 = vld [vmem:[%s3093_s8 + $0xd0] sm:$0xf] }
  0xd0   :  { %v1912_v29 = vld [vmem:[%s3093_s8 + $0xe0] sm:$0xf0]  ;;  %1330 = vmatpush.bf16.msrb.mxu1 %v1919_v39  ;;  %v2032_v39 = vld [vmem:[%s3093_s8 + $0x1b8] sm:$0xf0] }
  0xd1   :  { %v1915_v38 = vor.u32 %v2180_v25, %v1912_v29  ;;  %1342 = vmatpush.bf16.msrb.mxu2 %v1955_v28  ;;  %v1823_v25 = vor.u32 %v2161_v10, %v1822_v9  ;;  %v2059_v29 = vor.u32 %v2214_v17, %v2056_v18  ;;  %v1934_v9 = vld [vmem:[%s3093_s8 + $0xd8] sm:$0xf]  ;;  %v2178_v17 = vld [vmem:[%s3093_s8 + $0xac] sm:$0xf0]  ;;  %v2174_v18 = vld [vmem:[%s3093_s8 + $0x94] sm:$0xf] }
  0xd2   :  { %v2187_v10 = vld [vmem:[%s3093_s8 + $0xf4] sm:$0xf0] }
  0xd3   :  { %1317 = vmatpush.bf16.msrb.mxu0 %v1915_v38  ;;  %v2207_v38 = vld [vmem:[%s3093_s8 + $0x19c] sm:$0xf] }
  0xd4   :  { %1331 = vmatpush.bf16.msrb.mxu1 %v1887_v53  ;;  %v2199_v53 = vld [vmem:[%s3093_s8 + $0x15c] sm:$0xf] }
  0xd5   :  { %1343 = vmatpush.bf16.msrb.mxu2 %v1923_v44  ;;  %v1990_v44 = vld [vmem:[%s3093_s8 + $0x150] sm:$0xf]  ;;  %v2003_v55 = vor.u32 %v2199_v53, %v2000_v54 }
  0xd6   :  { %v1991_v47 = vor.u32 %v2202_v45, %v1990_v44  ;;  %v1838_v44 = vld [vmem:[%s3093_s8 + $0x18] sm:$0xf] }
  0xd7   :  { %1318 = vmatpush.bf16.msrb.mxu0 %v1883_v52  ;;  %v2163_v45 = vld [vmem:[%s3093_s8 + $0x34] sm:$0xf0] }
  0xd8   :  { %1332 = vmatpush.bf16.msrb.mxu1 %v1855_v3 }
  0xd9   :  { %1344 = vmatpush.bf16.msrb.mxu2 %v1891_v57  ;;  %v2194_v57 = vld [vmem:[%s3093_s8 + $0x12c] sm:$0xf0] }
  0xda   :  { %v1959_v59 = vor.u32 %v2194_v57, %v1958_v56 }
  0xdb   :  { %1319 = vmatpush.bf16.msrb.mxu0 %v1851_v2  ;;  %v1968_v2 = vld [vmem:[%s3093_s8 + $0x138] sm:$0xf0] }
  0xdc   :  { %1333 = vmatpush.bf16.msrb.mxu1 %v1823_v25  ;;  %v1971_v3 = vor.u32 %v2191_v1, %v1968_v2 }
  0xdd   :  { %1345 = vmatpush.bf16.msrb.mxu2 %v1859_v8  ;;  %v1928_v8 = vld [vmem:[%s3093_s8 + $0xf0] sm:$0xf0] }
  0xdf   :  { %1320 = vmatpush.bf16.msrb.mxu0 %v1819_v21 }
  0xe3   :  { %1365 = vmatpush.bf16.msra.mxu0 %v2059_v29 }
 0x14c   :  { %v786_v19 = vpop.f32.mrf.mxu0  ;;  %v799_v20 = vpop.f32.mrf.mxu1 }
 0x14d   :  { %v2774_v26 = vadd.f32 %v786_v19, %v693_v36  ;;  %v800_v27 = vadd.f32 %v799_v20, %v694_v37  ;;  %v1911_v36 = vor.u32 %v2184_v24, %v1910_v23  ;;  %v1878_v37 = vld [vmem:[%s3093_s8 + $0x80] sm:$0xf]  ;;  %v2062_v19 = vld [vmem:[%s3093_s8 + $0x1d8] sm:$0xf]  ;;  %v2215_v23 = vld [vmem:[%s3093_s8 + $0x1dc] sm:$0xf] }
 0x14e   :  { %v1879_v49 = vor.u32 %v2176_v40, %v1878_v37  ;;  %v2064_v24 = vld [vmem:[%s3093_s8 + $0x1f8] sm:$0xf0]  ;;  %v2063_v33 = vor.u32 %v2219_v22, %v2062_v19  ;;  %v2211_v37 = vld [vmem:[%s3093_s8 + $0x1b4] sm:$0xf0]  ;;  %v2023_v40 = vor.u32 %v2210_v31, %v2022_v30  ;;  %v1896_v19 = vld [vmem:[%s3093_s8 + $0xb0] sm:$0xf0] }
 0x14f   :  { %v804_v34 = vmul.f32 0.5, %v800_v27  ;;  %v2223_v35 = vpack.c.bf16 %v800_v27, %v2774_v26  ;;  %1304 = vmatpush.bf16.msra.mxu3 %v1911_v36  ;;  %v1827_v27 = vor.u32 %v2157_v11, %v1824_v13  ;;  %v2030_v36 = vld [vmem:[%s3093_s8 + $0x198] sm:$0xf]  ;;  %v1931_v11 = vor.u32 %v2182_v6, %v1928_v8  ;;  %v2183_v13 = vld [vmem:[%s3093_s8 + $0xdc] sm:$0xf] }
 0x150   :  { %1378 = vmatpush.bf16.msra.mxu1 %v2063_v33  ;;  %v2031_v42 = vor.u32 %v2211_v37, %v2030_v36  ;;  %v1899_v21 = vor.u32 %v2174_v18, %v1896_v19  ;;  %v1902_v22 = vld [vmem:[%s3093_s8 + $0x98] sm:$0xf]  ;;  %v2166_v30 = vld [vmem:[%s3093_s8 + $0x54] sm:$0xf]  ;;  %v1872_v36 = vld [vmem:[%s3093_s8 + $0x78] sm:$0xf0] }
 0x151   :  { %v805_v43 = vmul.f32 1.442695, %v804_v34  ;;  %2224 = vst [vmem:[%s3094_s11] sm:$0xff] %v2223_v35   ;;  %v2067_v34 = vor.u32 %v2215_v23, %v2064_v24  ;;  %v2024_v35 = vld [vmem:[%s3093_s8 + $0x1b0] sm:$0xf0]  ;;  %1346 = vmatpush.bf16.msrb.mxu2 %v1827_v27  ;;  %v2179_v23 = vld [vmem:[%s3093_s8 + $0xb4] sm:$0xf0] }
 0x152   :  { %v2027_v41 = vor.u32 %v2206_v32, %v2024_v35  ;;  %v2175_v24 = vld [vmem:[%s3093_s8 + $0x9c] sm:$0xf]  ;;  %v1903_v25 = vor.u32 %v2179_v23, %v1902_v22  ;;  %v1864_v31 = vld [vmem:[%s3093_s8 + $0x70] sm:$0xf0]  ;;  %v1870_v32 = vld [vmem:[%s3093_s8 + $0x58] sm:$0xf] }
 0x153   :  { %2227 = vpow2.f32 %v805_v43  ;;  %1305 = vmatpush.bf16.msra.mxu3 %v1879_v49  ;;  %v2035_v43 = vor.u32 %v2207_v38, %v2032_v39  ;;  %v1998_v49 = vld [vmem:[%s3093_s8 + $0x158] sm:$0xf]  ;;  %v1904_v27 = vld [vmem:[%s3093_s8 + $0xb8] sm:$0xf0]  ;;  %v1867_v37 = vor.u32 %v2166_v30, %v1864_v31  ;;  %v1830_v39 = vld [vmem:[%s3093_s8 + $0x10] sm:$0xf] }
 0x154   :  { %v788_v50 = vpop.f32.mrf.mxu0  ;;  %v801_v51 = vpop.f32.mrf.mxu1  ;;  %1366 = vmatpush.bf16.msra.mxu0 %v2027_v41  ;;  %1379 = vmatpush.bf16.msra.mxu1 %v2031_v42  ;;  %v1907_v29 = vor.u32 %v2175_v24, %v1904_v27  ;;  %v2167_v35 = vld [vmem:[%s3093_s8 + $0x5c] sm:$0xf]  ;;  %v2158_v41 = vld [vmem:[%s3093_s8 + $0x14] sm:$0xf] }
 0x155   :  { %v2203_v50 = vld [vmem:[%s3093_s8 + $0x174] sm:$0xf0]  ;;  %v1995_v51 = vor.u32 %v2198_v46, %v1992_v48  ;;  %v1875_v42 = vor.u32 %v2167_v35, %v1872_v36  ;;  %v2159_v46 = vld [vmem:[%s3093_s8 + $0x1c] sm:$0xf] }
 0x156   :  { %v1999_v52 = vor.u32 %v2203_v50, %v1998_v49  ;;  %v1839_v50 = vor.u32 %v2163_v45, %v1838_v44 }
 0x157   :  { %1306 = vmatpush.bf16.msra.mxu3 %v1847_v0  ;;  %v1967_v0 = vor.u32 %v2195_v62, %v1966_v61 }
 0x158   :  { %1367 = vmatpush.bf16.msra.mxu0 %v1995_v51  ;;  %1380 = vmatpush.bf16.msra.mxu1 %v1999_v52  ;;  %v2226_v52 = vld [vmem:[%s3091_s7] ss:$0 sm:$0xff] }
 0x159   :  { %v2228_v7 = vpop.eup %2227 }
 0x15a   :  { %v807_v12 = vmul.f32 %v2228_v7, %v803_v63  ;;  %v1963_v63 = vor.u32 %v2190_v58, %v1960_v60  ;;  %v1927_v7 = vor.u32 %v2186_v5, %v1926_v4  ;;  %v962_v58 = vld [vmem:[%s3096_s9] sm:$0xff] }
 0x15b   :  { %1307 = vmatpush.bf16.msra.mxu3 %v1815_v16  ;;  %v966_v60 = vperm.slane %v962_v58, 2  ;;  %v964_v2 = vperm.slane %v962_v58, 0  ;;  %v967_v4 = vperm.slane %v962_v58, 3  ;;  %v969_v18 = vperm.slane %v962_v58, 5 }
 0x15c   :  { %v808_v20 = vadd.f32 %v807_v12, %v2774_v26  ;;  %v2055_v26 = vor.u32 %v2218_v15, %v2054_v14  ;;  %1368 = vmatpush.bf16.msra.mxu0 %v1963_v63  ;;  %1381 = vmatpush.bf16.msra.mxu1 %v1967_v0  ;;  %v1935_v12 = vor.u32 %v2187_v10, %v1934_v9  ;;  %v1936_v14 = vld [vmem:[%s3093_s8 + $0xf8] sm:$0xf0]  ;;  %v1894_v15 = vld [vmem:[%s3093_s8 + $0x90] sm:$0xf]  ;;  %v968_v31 = vperm.slane %v962_v58, 4 }
 0x15d   :  { %v1939_v16 = vor.u32 %v2183_v13, %v1936_v14  ;;  %v971_v35 = vperm.slane %v962_v58, 7 }
 0x15e   :  { %v813_v28 = vpack.c.bf16 %v808_v20, %v808_v20  ;;  %v1895_v20 = vor.u32 %v2178_v17, %v1894_v15 }
 0x15f   :  { %1352 = vmatpush.bf16.msrb.mxu3 %v2055_v26  ;;  %v2170_v26 = vld [vmem:[%s3093_s8 + $0x6c] sm:$0xf0] }
 0x160   :  { %814 = vst [vmem:[%s3094_s11 + $0x8] sm:$0xf] %v813_v28  ;;  %891 = vmatmul.bf16.vlgmr.msra.gmra.mxu2 %v813_v28  ;;  %1369 = vmatpush.bf16.msra.mxu0 %v1931_v11  ;;  %v1862_v28 = vld [vmem:[%s3093_s8 + $0x50] sm:$0xf] }
 0x161   :  { %1391 = vmatpush.bf16.msra.mxu2 %v2067_v34  ;;  %1382 = vmatpush.bf16.msra.mxu1 %v1935_v12  ;;  %v1863_v33 = vor.u32 %v2170_v26, %v1862_v28  ;;  %v2171_v34 = vld [vmem:[%s3093_s8 + $0x74] sm:$0xf0] }
 0x162   :  { %v1871_v38 = vor.u32 %v2171_v34, %v1870_v32 }
 0x163   :  { %1353 = vmatpush.bf16.msrb.mxu3 %v2023_v40  ;;  %v2162_v40 = vld [vmem:[%s3093_s8 + $0x2c] sm:$0xf0] }
 0x164   :  { %1370 = vmatpush.bf16.msra.mxu0 %v1899_v21  ;;  %v1831_v48 = vor.u32 %v2162_v40, %v1830_v39  ;;  %v970_v21 = vperm.slane %v962_v58, 6 }
 0x165   :  { %1392 = vmatpush.bf16.msra.mxu2 %v2035_v43  ;;  %1383 = vmatpush.bf16.msra.mxu1 %v1903_v25  ;;  %v1832_v43 = vld [vmem:[%s3093_s8 + $0x30] sm:$0xf0] }
 0x166   :  { %v1835_v49 = vor.u32 %v2158_v41, %v1832_v43 }
 0x167   :  { %1354 = vmatpush.bf16.msrb.mxu3 %v1991_v47  ;;  %v1840_v47 = vld [vmem:[%s3093_s8 + $0x38] sm:$0xf0] }
 0x168   :  { %1371 = vmatpush.bf16.msra.mxu0 %v1867_v37  ;;  %v1843_v51 = vor.u32 %v2159_v46, %v1840_v47 }
 0x169   :  { %1393 = vmatpush.bf16.msra.mxu2 %v2003_v55  ;;  %1384 = vmatpush.bf16.msra.mxu1 %v1871_v38 }
 0x16b   :  { %1355 = vmatpush.bf16.msrb.mxu3 %v1959_v59  ;;  %v965_v59 = vperm.slane %v962_v58, 1 }
 0x16c   :  { %1372 = vmatpush.bf16.msra.mxu0 %v1835_v49 }
 0x16d   :  { %1394 = vmatpush.bf16.msra.mxu2 %v1971_v3  ;;  %1385 = vmatpush.bf16.msra.mxu1 %v1839_v50 }
 0x16f   :  { %1356 = vmatpush.bf16.msrb.mxu3 %v1927_v7 }
 0x171   :  { %1395 = vmatpush.bf16.msra.mxu2 %v1939_v16 }
 0x173   :  { %1357 = vmatpush.bf16.msrb.mxu3 %v1895_v20 }
 0x175   :  { %1396 = vmatpush.bf16.msra.mxu2 %v1907_v29 }
 0x177   :  { %1358 = vmatpush.bf16.msrb.mxu3 %v1863_v33 }
 0x179   :  { %1397 = vmatpush.bf16.msra.mxu2 %v1875_v42 }
 0x17b   :  { %1359 = vmatpush.bf16.msrb.mxu3 %v1831_v48 }
 0x17d   :  { %1398 = vmatpush.bf16.msra.mxu2 %v1843_v51 }
 0x1e3   :  { %v892_v53 = vpop.f32.mrf.mxu2 }
 0x1e4   :  { %v893_v54 = vadd.f32 %v2226_v52, %v892_v53 }
 0x1e6   :  { %v896_v55 = vmax.f32 %v893_v54, 0.0 }
 0x1e8   :  { %v897_v56 = vpack.c.bf16 %v896_v55, %v896_v55 }
 0x1ea   :  { %1308 = vmatmul.bf16.vlgmr.msra.gmra.mxu3 %v897_v56  ;;  %1321 = vmatmul.bf16.vlgmr.msrb.gmra.mxu0 %v897_v56 }
 0x1eb   :  { %1334 = vmatmul.bf16.vlgmr.msrb.gmra.mxu1 %v897_v56  ;;  %1347 = vmatmul.bf16.vlgmr.msrb.gmra.mxu2 %v897_v56  ;;  %v894_v57 = vpop.f32.mrf.mxu2 }
 0x1fa   :  { %1360 = vmatmul.bf16.vlgmr.msrb.gmra.mxu3 %v897_v56  ;;  %1373 = vmatmul.bf16.vlgmr.msra.gmra.mxu0 %v897_v56 }
 0x1fb   :  { %1386 = vmatmul.bf16.vlgmr.msra.gmra.mxu1 %v897_v56  ;;  %1399 = vmatmul.bf16.vlgmr.msra.gmra.mxu2 %v897_v56 }
 0x267   :  { %v1322_v61 = vpop.f32.mrf.mxu0 }
 0x268   :  { %v1323_v62 = vadd.f32 %v1322_v61, %v965_v59  ;;  %v1335_v63 = vpop.f32.mrf.mxu1 }
 0x269   :  { %v1336_v0 = vadd.f32 %v1335_v63, %v966_v60 }
 0x26a   :  { %v1405_v1 = vsub.f32 0.0, %v1323_v62 }
 0x26b   :  { %v1406_v3 = vsub.f32 0.0, %v1336_v0 }
 0x26c   :  { %v1414_v5 = vmul.f32 1.442695, %v1405_v1 }
 0x26d   :  { %v1416_v6 = vmul.f32 1.442695, %v1406_v3  ;;  %v1309_v7 = vpop.f32.mrf.mxu3 }
 0x26e   :  { %2229 = vpow2.f32 %v1414_v5  ;;  %v1310_v8 = vadd.f32 %v1309_v7, %v964_v2  ;;  %v1348_v9 = vpop.f32.mrf.mxu2 }
 0x26f   :  { %2231 = vpow2.f32 %v1416_v6  ;;  %v1349_v10 = vadd.f32 %v1348_v9, %v967_v4  ;;  %v1324_v11 = vpop.f32.mrf.mxu0 }
 0x270   :  { %v1404_v12 = vsub.f32 0.0, %v1310_v8  ;;  %v1337_v13 = vpop.f32.mrf.mxu1 }
 0x271   :  { %v1407_v14 = vsub.f32 0.0, %v1349_v10 }
 0x272   :  { %v1412_v15 = vmul.f32 1.442695, %v1404_v12 }
 0x273   :  { %v1418_v16 = vmul.f32 1.442695, %v1407_v14 }
 0x274   :  { %v2230_v17 = vpop.eup %2229  ;;  %2233 = vpow2.f32 %v1412_v15 }
 0x275   :  { %v2232_v19 = vpop.eup %2231  ;;  %2235 = vpow2.f32 %v1418_v16  ;;  %v1311_v20 = vpop.f32.mrf.mxu3  ;;  %v1429_v23 = vadd.f32 1.0, %v2230_v17 }
 0x276   :  { %v1350_v22 = vpop.f32.mrf.mxu2  ;;  %v1430_v25 = vadd.f32 1.0, %v2232_v19 }
 0x277   :  { %v1374_v24 = vpop.f32.mrf.mxu0  ;;  %2237 = vrcp.f32 %v1429_v23 }
 0x278   :  { %v1375_v27 = vadd.f32 %v1374_v24, %v969_v18  ;;  %v1387_v28 = vpop.f32.mrf.mxu1  ;;  %2239 = vrcp.f32 %v1430_v25 }
 0x279   :  { %v1388_v26 = vadd.f32 %v1387_v28, %v970_v21 }
 0x27a   :  { %v2234_v29 = vpop.eup %2233  ;;  %v1409_v30 = vsub.f32 0.0, %v1375_v27 }
 0x27b   :  { %v2236_v32 = vpop.eup %2235  ;;  %v1428_v33 = vadd.f32 1.0, %v2234_v29  ;;  %v1410_v34 = vsub.f32 0.0, %v1388_v26 }
 0x27c   :  { %v1431_v36 = vadd.f32 1.0, %v2236_v32  ;;  %v1422_v37 = vmul.f32 1.442695, %v1409_v30 }
 0x27d   :  { %2241 = vrcp.f32 %v1428_v33  ;;  %v1424_v38 = vmul.f32 1.442695, %v1410_v34  ;;  %v1361_v39 = vpop.f32.mrf.mxu3  ;;  %v2238_v46 = vpop.eup %2237 }
 0x27e   :  { %2243 = vrcp.f32 %v1431_v36  ;;  %v1362_v40 = vadd.f32 %v1361_v39, %v968_v31  ;;  %v1400_v41 = vpop.f32.mrf.mxu2  ;;  %v2240_v48 = vpop.eup %2239 }
 0x27f   :  { %2245 = vpow2.f32 %v1422_v37  ;;  %v1401_v42 = vadd.f32 %v1400_v41, %v971_v35  ;;  %v1376_v43 = vpop.f32.mrf.mxu0 }
 0x280   :  { %2247 = vpow2.f32 %v1424_v38  ;;  %v1408_v44 = vsub.f32 0.0, %v1362_v40  ;;  %v1389_v45 = vpop.f32.mrf.mxu1 }
 0x281   :  { %v1411_v47 = vsub.f32 0.0, %v1401_v42 }
 0x282   :  { %v1420_v49 = vmul.f32 1.442695, %v1408_v44 }
 0x283   :  { %v2242_v50 = vpop.eup %2241  ;;  %v1426_v51 = vmul.f32 1.442695, %v1411_v47 }
 0x284   :  { %v2244_v52 = vpop.eup %2243  ;;  %v1444_v53 = vpack.c.bf16 %v2238_v46, %v2242_v50  ;;  %2249 = vpow2.f32 %v1420_v49 }
 0x285   :  { %v2246_v54 = vpop.eup %2245  ;;  %v1445_v55 = vpack.c.bf16 %v2244_v52, %v2240_v48  ;;  %2251 = vpow2.f32 %v1426_v51  ;;  %v1363_v56 = vpop.f32.mrf.mxu3 }
 0x286   :  { %v2248_v57 = vpop.eup %2247  ;;  %1448 = vst [vmem:[%s3097_s10] sm:$0xff] %v1444_v53  ;;  %v1402_v58 = vpop.f32.mrf.mxu2  ;;  %v1433_v59 = vadd.f32 1.0, %v2246_v54 }
 0x287   :  { %1449 = vst [vmem:[%s3097_s10 + $0x8] sm:$0xff] %v1445_v55  ;;  %v1434_v60 = vadd.f32 1.0, %v2248_v57 }
 0x288   :  { %2253 = vrcp.f32 %v1433_v59 }
 0x289   :  { %2255 = vrcp.f32 %v1434_v60 }
 0x28a   :  { %v2250_v61 = vpop.eup %2249 }
 0x28b   :  { %v2252_v62 = vpop.eup %2251  ;;  %v1432_v63 = vadd.f32 1.0, %v2250_v61 }
 0x28c   :  { %v1435_v0 = vadd.f32 1.0, %v2252_v62 }
 0x28d   :  { %2257 = vrcp.f32 %v1432_v63 }
 0x28e   :  { %2259 = vrcp.f32 %v1435_v0  ;;  %v2254_v1 = vpop.eup %2253 }
 0x28f   :  { %v2256_v2 = vpop.eup %2255 }
 0x293   :  { %v2258_v3 = vpop.eup %2257 }
 0x294   :  { %v2260_v4 = vpop.eup %2259  ;;  %v1446_v5 = vpack.c.bf16 %v2254_v1, %v2258_v3 }
 0x295   :  { %v1447_v6 = vpack.c.bf16 %v2260_v4, %v2256_v2 }
 0x296   :  { %1450 = vst [vmem:[%s3097_s10 + $0x10] sm:$0xff] %v1446_v5 }
 0x297   :  { %1451 = vst [vmem:[%s3097_s10 + $0x18] sm:$0xff] %v1447_v6 }

</bundles_post_ra>
